<compile_context>
chip_gen: v5e
topology: v5e:2x2
jax: 0.10.0
libtpu: 0.0.40
codegen_flags: <defaults>
</compile_context>

<pallas_src>
import jax
import jax.numpy as jnp
from jax import lax
from jax.experimental import pallas as pl
from jax.experimental.pallas import tpu as pltpu


def mlp_kernel(x_ref, w1t_ref, b1_ref, w2_ref, b2_ref, o_ref):
    # x_ref:   (bt, in)        input rows for this tile
    # w1t_ref: (hidden, in)    first-layer weights, pre-transposed
    # b1_ref:  (hidden, 1)     first-layer bias as a column (VMEM)
    # w2_ref:  (hidden, 1)     second-layer weights as a column (VMEM)
    # b2_ref:  (1,)            second-layer bias (SMEM scalar)
    # o_ref:   (1, bt)         lane-dense output row (batch on lanes)

    # Hidden layer computed transposed: (hidden, in) . (bt, in)^T -> (hidden, bt).
    # Output is lane-dense in the batch dimension, so no relayout is needed.
    h_t = lax.dot_general(
        w1t_ref[...], x_ref[...],
        dimension_numbers=(((1,), (1,)), ((), ())),
        preferred_element_type=jnp.float32,
    )
    h_t = jnp.maximum(h_t + b1_ref[...], 0.0)          # bias + ReLU (VPU)

    # 40 -> 1 projection: VPU multiply + sublane reduction (cheap, hides under
    # the per-step DMA) instead of an N=1 MXU matmul.  Result is (1, bt).
    y = jnp.sum(h_t * w2_ref[...], axis=0, keepdims=True) + b2_ref[0]

    # Sigmoid: exp rides the EUP; exact divide (memory-bound => free) keeps
    # parity with the f32 reference tighter than approx reciprocal.
    o_ref[...] = (1.0 / (1.0 + jnp.exp(-y))).astype(o_ref.dtype)


def _round_up(v, m):
    return ((v + m - 1) // m) * m


def net_forward(x, w1, b1, w2, b2, *, batch_tile=8192, stream_bf16=False):
    """Forward pass of Net:  y = sigmoid(relu(x @ w1 + b1) @ w2 + b2).

    x:  (B, in)  float32
    w1: (in, hidden), b1: (1, hidden), w2: (hidden, 1), b2: (1, 1)
    """
    B, in_dim = x.shape
    hidden = w1.shape[1]

    # Tiny parameter re-layouts (done once, outside the kernel; negligible).
    w1_t = jnp.asarray(w1).T                                  # (hidden, in)
    b1_c = jnp.reshape(b1, (hidden, 1)).astype(jnp.float32)   # (hidden, 1)
    w2_c = jnp.reshape(w2, (hidden, 1)).astype(jnp.float32)   # (hidden, 1)
    b2_s = jnp.reshape(b2, (1,)).astype(jnp.float32)          # (1,) -> SMEM

    x_in = x
    if stream_bf16:
        # Halves HBM bytes for x / w1 — but only worthwhile if the caller can
        # hand us bf16 directly; a wrapper-side cast is an extra HBM pass.
        x_in = x.astype(jnp.bfloat16)
        w1_t = w1_t.astype(jnp.bfloat16)

    # Tile selection.
    SINGLE_TILE_MAX = 1024
    if B <= SINGLE_TILE_MAX:
        # Whole batch in one invocation: full-dim blocks, no (8,128) padding
        # constraints, no grid overhead.
        bt = B
    else:
        # Big lane/MXU-friendly tiles: >= ~1 MiB of x per step amortizes the
        # ~0.35us per-grid-step overhead against HBM streaming time on all of
        # v5e / v6e / v7x.  Cap at 16384 so the lane-padded (bt,128) f32 x
        # double-buffer (bt*1KiB) stays well inside v7x's 64 MiB VMEM.
        bt = max(256, min((batch_tile // 256) * 256, 16384))
        # Guarantee >= 2 grid steps so the "parallel" axis can shard the work
        # across v7x's two TensorCores (harmless on single-TC v5e / v6e).
        half = _round_up(pl.cdiv(B, 2), 256)
        bt = min(bt, max(256, half))

    grid = (pl.cdiv(B, bt),)   # ragged last block handled by Pallas; no jnp.pad

    # Generous scoped-VMEM limit: covers double-buffered (bt,30)->(bt,128)
    # f32 x blocks plus the (hidden, bt) intermediates at bt=16384 (~24 MiB),
    # above v5e's 16 MiB default and below v7x's 64 MiB physical VMEM.
    vmem_limit = 48 * 1024 * 1024

    out_row = pl.pallas_call(
        mlp_kernel,
        out_shape=jax.ShapeDtypeStruct((1, B), jnp.float32),
        grid_spec=pltpu.PrefetchScalarGridSpec(
            num_scalar_prefetch=0,
            grid=grid,
            in_specs=[
                pl.BlockSpec((bt, in_dim), lambda i: (i, 0)),       # x tile
                pl.BlockSpec((hidden, in_dim), lambda i: (0, 0)),   # w1^T (full)
                pl.BlockSpec((hidden, 1), lambda i: (0, 0)),        # b1 column
                pl.BlockSpec((hidden, 1), lambda i: (0, 0)),        # w2 column
                pl.BlockSpec(memory_space=pltpu.MemorySpace.SMEM),  # b2 scalar
            ],
            out_specs=pl.BlockSpec((1, bt), lambda i: (0, i)),      # lane-dense
        ),
        compiler_params=pltpu.CompilerParams(
            dimension_semantics=("parallel",),   # megacore / dual-TC sharding
            vmem_limit_bytes=vmem_limit,
        ),
    )(x_in, w1_t, b1_c, w2_c, b2_s)

    # (1, B) row -> (B, 1) column (pure reshape, element order preserved).
    return out_row.reshape(B, 1)


def init_params(key, input_size=30, scale=4):
    hidden = 10 * scale
    k1, k2, k3, k4 = jax.random.split(key, 4)
    # Deterministic synthetic init (uniform, roughly like torch default bounds)
    bound1 = 1.0 / jnp.sqrt(input_size)
    bound2 = 1.0 / jnp.sqrt(hidden)
    w1 = jax.random.uniform(k1, (input_size, hidden), jnp.float32, -bound1, bound1)
    b1 = jax.random.uniform(k2, (1, hidden), jnp.float32, -bound1, bound1)
    w2 = jax.random.uniform(k3, (hidden, 1), jnp.float32, -bound2, bound2)
    b2 = jax.random.uniform(k4, (1, 1), jnp.float32, -bound2, bound2)
    return w1, b1, w2, b2


def _reference(x, w1, b1, w2, b2):
    return jax.nn.sigmoid(jnp.maximum(x @ w1 + b1, 0.0) @ w2 + b2)


if __name__ == "__main__":
    key = jax.random.PRNGKey(0)
    kx, kp, kx2 = jax.random.split(key, 3)

    input_size = 30
    scale = 4
    w1, b1, w2, b2 = init_params(kp, input_size=input_size, scale=scale)

    # Small demo batch (single-invocation fast path), matching the spec scale.
    batch = 16
    x = jax.random.normal(kx, (batch, input_size), dtype=jnp.float32)
    out = jax.block_until_ready(net_forward(x, w1, b1, w2, b2))
    ref = _reference(x, w1, b1, w2, b2)
    assert out.shape == (batch, 1)
    # Tolerance covers MXU default-precision matmul vs. the XLA reference path.
    assert jnp.allclose(out, ref, atol=2e-3, rtol=2e-3)

    # Larger ragged batch: exercises the tiled path (>=2 "parallel" grid steps,
    # partial last block, no wrapper-side padding of x).
    batch_big = 1300
    x_big = jax.random.normal(kx2, (batch_big, input_size), dtype=jnp.float32)
    out_big = jax.block_until_ready(net_forward(x_big, w1, b1, w2, b2))
    ref_big = _reference(x_big, w1, b1, w2, b2)
    assert out_big.shape == (batch_big, 1)
    assert jnp.allclose(out_big, ref_big, atol=2e-3, rtol=2e-3)

    print("KERNEL_OK")
</pallas_src>

<mosaic_0001>
module attributes {stable_mosaic.version = 11 : i64} {
  func.func @mlp_kernel(%arg0: i32, %arg1: memref<16x30xf32, #tpu.memory_space<vmem>>, %arg2: memref<40x30xf32, #tpu.memory_space<vmem>>, %arg3: memref<40x1xf32, #tpu.memory_space<vmem>>, %arg4: memref<40x1xf32, #tpu.memory_space<vmem>>, %arg5: memref<1xf32, #tpu.memory_space<smem>>, %arg6: memref<1x16xf32, #tpu.memory_space<vmem>>) attributes {dimension_semantics = [#tpu.dimension_semantics<parallel>], iteration_bounds = array<i64: 1>, scalar_prefetch = 0 : i64, scratch_operands = 0 : i64, tpu.core_type = #tpu.core_type<tc>, window_params = [{transform_indices = @transform_0, window_bounds = array<i64: 16, 30>}, {pipeline_mode = #tpu.pipeline_mode<synchronous>, transform_indices = @transform_1, window_bounds = array<i64: 40, 30>}, {pipeline_mode = #tpu.pipeline_mode<synchronous>, transform_indices = @transform_2, window_bounds = array<i64: 40, 1>}, {pipeline_mode = #tpu.pipeline_mode<synchronous>, transform_indices = @transform_3, window_bounds = array<i64: 40, 1>}, {transform_indices = @transform_4, window_bounds = array<i64: 1>}, {transform_indices = @transform_5, window_bounds = array<i64: 1, 16>}]} {
    %c0 = arith.constant 0 : index
    %c0_0 = arith.constant 0 : index
    %0 = vector.load %arg2[%c0, %c0_0] : memref<40x30xf32, #tpu.memory_space<vmem>>, vector<40x30xf32>
    %c0_1 = arith.constant 0 : index
    %c0_2 = arith.constant 0 : index
    %1 = vector.load %arg1[%c0_1, %c0_2] : memref<16x30xf32, #tpu.memory_space<vmem>>, vector<16x30xf32>
    %cst = arith.constant dense<0.000000e+00> : vector<40x16xf32>
    %2 = tpu.matmul %0, %1, %cst {dimension_numbers = #tpu.dot_dimension_numbers<[1], [1], [0], [0], [0, 0, 1, 0], [], []>} : vector<40x30xf32>, vector<16x30xf32>, vector<40x16xf32> -> vector<40x16xf32>
    %c0_3 = arith.constant 0 : index
    %c0_4 = arith.constant 0 : index
    %3 = vector.load %arg3[%c0_3, %c0_4] : memref<40x1xf32, #tpu.memory_space<vmem>>, vector<40x1xf32>
    %4 = vector.broadcast %3 : vector<40x1xf32> to vector<40x16xf32>
    %5 = arith.addf %2, %4 : vector<40x16xf32>
    %cst_5 = arith.constant 0.000000e+00 : f32
    %6 = vector.broadcast %cst_5 : f32 to vector<40x16xf32>
    %7 = arith.maximumf %5, %6 : vector<40x16xf32>
    %c0_6 = arith.constant 0 : index
    %c0_7 = arith.constant 0 : index
    %8 = vector.load %arg4[%c0_6, %c0_7] : memref<40x1xf32, #tpu.memory_space<vmem>>, vector<40x1xf32>
    %9 = vector.broadcast %8 : vector<40x1xf32> to vector<40x16xf32>
    %10 = arith.mulf %7, %9 : vector<40x16xf32>
    %cst_8 = arith.constant dense<0.000000e+00> : vector<16xf32>
    %11 = vector.multi_reduction <add>, %10, %cst_8 [0] : vector<40x16xf32> to vector<16xf32>
    %12 = vector.shape_cast %11 : vector<16xf32> to vector<1x16xf32>
    %c0_9 = arith.constant 0 : index
    %13 = memref.load %arg5[%c0_9] : memref<1xf32, #tpu.memory_space<smem>>
    %14 = vector.broadcast %13 : f32 to vector<1x16xf32>
    %15 = arith.addf %12, %14 : vector<1x16xf32>
    %cst_10 = arith.constant 0.000000e+00 : f32
    %16 = vector.broadcast %cst_10 : f32 to vector<1x16xf32>
    %17 = arith.subf %16, %15 : vector<1x16xf32>
    %18 = math.exp %17 : vector<1x16xf32>
    %cst_11 = arith.constant 1.000000e+00 : f32
    %19 = vector.broadcast %cst_11 : f32 to vector<1x16xf32>
    %20 = arith.addf %19, %18 : vector<1x16xf32>
    %cst_12 = arith.constant 1.000000e+00 : f32
    %21 = vector.broadcast %cst_12 : f32 to vector<1x16xf32>
    %22 = arith.divf %21, %20 : vector<1x16xf32>
    %c0_13 = arith.constant 0 : index
    %c0_14 = arith.constant 0 : index
    %23 = vector.load %arg6[%c0_13, %c0_14] : memref<1x16xf32, #tpu.memory_space<vmem>>, vector<1x16xf32>
    tpu.vector_store %arg6[%c0_13, %c0_14], %22 {strides = array<i32>} : memref<1x16xf32, #tpu.memory_space<vmem>>, vector<1x16xf32>,
    return
  }
  func.func @transform_0(%arg0: i32) -> (i32, i32) {
    %c0_i32 = arith.constant 0 : i32
    %c0_i32_0 = arith.constant 0 : i32
    return %arg0, %c0_i32 : i32, i32
  }
  func.func @transform_1(%arg0: i32) -> (i32, i32) {
    %c0_i32 = arith.constant 0 : i32
    %c0_i32_0 = arith.constant 0 : i32
    %c0_i32_1 = arith.constant 0 : i32
    return %c0_i32, %c0_i32_0 : i32, i32
  }
  func.func @transform_2(%arg0: i32) -> (i32, i32) {
    %c0_i32 = arith.constant 0 : i32
    %c0_i32_0 = arith.constant 0 : i32
    %c0_i32_1 = arith.constant 0 : i32
    return %c0_i32, %c0_i32_0 : i32, i32
  }
  func.func @transform_3(%arg0: i32) -> (i32, i32) {
    %c0_i32 = arith.constant 0 : i32
    %c0_i32_0 = arith.constant 0 : i32
    %c0_i32_1 = arith.constant 0 : i32
    return %c0_i32, %c0_i32_0 : i32, i32
  }
  func.func @transform_4(%arg0: i32) -> i32 {
    %c0_i32 = arith.constant 0 : i32
    %c0_i32_0 = arith.constant 0 : i32
    return %c0_i32 : i32
  }
  func.func @transform_5(%arg0: i32) -> (i32, i32) {
    %c0_i32 = arith.constant 0 : i32
    %c0_i32_0 = arith.constant 0 : i32
    return %c0_i32, %arg0 : i32, i32
  }
}

</mosaic_0001>

<bundles_post_ra>
// kernel: tpu_custom_call.1
= control target key start
LH: loop header
LB: loop body
LE: loop exit
PB: predicated region body
PF: predicated region fallthrough
CT: control target
= control target key end

     0   :  { %vm59_vm0 = vcmask 244736   ;;  %v257_v1 = vmov 0   ;;  %s364_s0 = inlined_call_operand.vmem [shape: f32[16,30], index: 0, kind: input, shape index: {}]   ;;  %s365_s1 = inlined_call_operand.vmem [shape: f32[40,30], index: 1, kind: input, shape index: {}]   ;;  %s366_s2 = inlined_call_operand.vmem [shape: f32[40,1], index: 2, kind: input, shape index: {}]   ;;  %s367_s3 = inlined_call_operand.vmem [shape: f32[40,1], index: 3, kind: input, shape index: {}]   ;;  %s368_s4 = inlined_call_operand.<no memory space> [shape: f32[1], index: 4, kind: input, shape index: {}]   ;;  %s369_s5 = inlined_call_operand.hbm [shape: f32[1,16], index: 5, kind: output, shape index: {}]  }
   0x1   :  { %v28_v0 = vld [vmem:[%s364_s0 + $0x8] sm:$0xff]  ;;  %225 = vset.pattern.permute.xlu1 %v257_v1  ;;  %224 = vset.pattern.permute.xlu0 %v257_v1  ;;  %v31_v2 = vld [vmem:[%s366_s2 + $0x10] sm:$0xff]  ;;  %v29_v3 = vld [vmem:[%s366_s2] sm:$0xff] }
   0x2   :  { %209 = vmatpush.xpose.msk.msra.mxu0 %vm59_vm0, %v28_v0  ;;  %216 = vmatpush.xpose.msk.msra.mxu1 %vm59_vm0, %v28_v0  ;;  %v27_v4 = vld [vmem:[%s364_s0] sm:$0xff] }
   0x3   :  { %217 = vmatpush.xpose.msk.msra.mxu2 %vm59_vm0, %v28_v0  ;;  %218 = vmatpush.xpose.msk.msra.mxu3 %vm59_vm0, %v28_v0  ;;  %v118_v5 = vld [vmem:[%s367_s3] sm:$0xff] }
   0x4   :  { %46 = vperm.xlu1 %225, %v31_v2   ;;  %36 = vperm.xlu0 %224, %v29_v3  }
   0x5   :  { %226 = vset.pattern.permute.xlu2 %v257_v1 }
   0x6   :  { %11 = vsyncpa [#allocation4], 0  ;;  %210 = vmatpush.xpose.msk.msra.mxu0 %vm59_vm0, %v27_v4  ;;  %219 = vmatpush.xpose.msk.msra.mxu1 %vm59_vm0, %v27_v4  ;;  %v22_v6 = vld [vmem:[%s365_s1] sm:$0xff]  ;;  %v23_v7 = vld [vmem:[%s365_s1 + $0x8] sm:$0xff]  ;;  %vm153_vm1 = vcmask 130048   ;;  %v170_v62 = vstv %s368_s4  ;;  %s258_s25 = smov [#allocation3]  }
   0x7   :  { %220 = vmatpush.xpose.msk.msra.mxu2 %vm59_vm0, %v27_v4  ;;  %221 = vmatpush.xpose.msk.msra.mxu3 %vm59_vm0, %v27_v4  ;;  %v24_v8 = vld [vmem:[%s365_s1 + $0x10] sm:$0xff]  ;;  %v25_v9 = vld [vmem:[%s365_s1 + $0x18] sm:$0xff]  ;;  %v30_v11 = vld [vmem:[%s366_s2 + $0x8] sm:$0xff]  ;;  %s198_s26 = sshll.u32 %s258_s25, 4  ;;  %s200_s4 = sshll.u32 %s369_s5, 4  ;;  %vm191_vm5 = vcmask 122880   ;;  %s199_s26 = int_to_ptr.vmem [resolvable:$true] %s198_s26  ;;  %s201_s4 = int_to_ptr.hbm [resolvable:$true] %s200_s4 }
   0x8   :  { %125 = vperm.xlu2 %226, %v118_v5   ;;  %v32_v10 = vld [vmem:[%s366_s2 + $0x18] sm:$0xff]  ;;  %v119_v12 = vld [vmem:[%s367_s3 + $0x8] sm:$0xff]  ;;  %v26_v13 = vld [vmem:[%s365_s1 + $0x20] sm:$0xff] }
   0x9   :  { %211 = vmatmul.msk.f32.vlgmr.msra.gmra.mxu0 %vm59_vm0, %v22_v6  ;;  %212 = vmatmul.msk.f32.vlgmr.msra.gmra.mxu1 %vm59_vm0, %v23_v7  ;;  %v120_v14 = vld [vmem:[%s367_s3 + $0x10] sm:$0xff]  ;;  %v33_v15 = vld [vmem:[%s366_s2 + $0x20] sm:$0xff]  ;;  %v121_v16 = vld [vmem:[%s367_s3 + $0x18] sm:$0xff] }
   0xa   :  { %213 = vmatmul.msk.f32.vlgmr.msra.gmra.mxu2 %vm59_vm0, %v24_v8  ;;  %214 = vmatmul.msk.f32.vlgmr.msra.gmra.mxu3 %vm59_vm0, %v25_v9  ;;  %v122_v17 = vld [vmem:[%s367_s3 + $0x20] sm:$0xff] }
   0xc   :  { %51 = vperm.xlu1 %225, %v32_v10   ;;  %41 = vperm.xlu0 %224, %v30_v11  }
  0x10   :  { %130 = vperm.xlu2 %226, %v119_v12  }
  0x12   :  { %215 = vmatmul.msk.f32.gmra.mxu3 %vm59_vm0, %v26_v13 }
  0x14   :  { %135 = vperm.xlu1 %225, %v120_v14   ;;  %56 = vperm.xlu0 %224, %v33_v15  }
  0x18   :  { %140 = vperm.xlu2 %226, %v121_v16  }
  0x1c   :  { %145 = vperm.xlu0 %224, %v122_v17  }
  0x62   :  { %v126_v20 = vpop.permute.xlu2 %125 }
  0x6a   :  { %v131_v29 = vpop.permute.xlu2 %130 }
  0x72   :  { %v141_v44 = vpop.permute.xlu2 %140 }
  0x76   :  { %v37_v18 = vpop.permute.xlu0 %36  ;;  %v47_v19 = vpop.permute.xlu1 %46 }
  0x7e   :  { %v42_v21 = vpop.permute.xlu0 %41  ;;  %v52_v22 = vpop.permute.xlu1 %51 }
  0x86   :  { %v98_v23 = vpop.f32.mrf.mxu0  ;;  %v101_v24 = vpop.f32.mrf.mxu1 }
  0x87   :  { %v99_v25 = vadd.f32 %v98_v23, %v37_v18  ;;  %v102_v26 = vadd.f32 %v101_v24, %v42_v21  ;;  %v57_v36 = vpop.permute.xlu0 %56  ;;  %v136_v38 = vpop.permute.xlu1 %135 }
  0x89   :  { %v113_v27 = vmax.f32 %v99_v25, 0.0  ;;  %v114_v28 = vmax.f32 %v102_v26, 0.0 }
  0x8b   :  { %v148_v32 = vmul.f32 %v126_v20, %v113_v27  ;;  %v149_v33 = vmul.f32 %v131_v29, %v114_v28 }
  0x8d   :  { %v104_v30 = vpop.f32.mrf.mxu2  ;;  %v107_v31 = vpop.f32.mrf.mxu3  ;;  %v154_v39 = vsel %vm153_vm1, %v148_v32, 0.0  ;;  %v155_v40 = vsel %vm153_vm1, %v149_v33, 0.0 }
  0x8e   :  { %v105_v34 = vadd.f32 %v104_v30, %v47_v19  ;;  %v108_v35 = vadd.f32 %v107_v31, %v52_v22  ;;  %v156_v45 = vadd.f32 %v155_v40, %v154_v39 }
  0x8f   :  { %v146_v51 = vpop.permute.xlu0 %145 }
  0x90   :  { %v115_v37 = vmax.f32 %v105_v34, 0.0  ;;  %v116_v42 = vmax.f32 %v108_v35, 0.0 }
  0x92   :  { %v150_v41 = vmul.f32 %v136_v38, %v115_v37  ;;  %v151_v47 = vmul.f32 %v141_v44, %v116_v42 }
  0x94   :  { %v157_v43 = vsel %vm153_vm1, %v150_v41, 0.0  ;;  %v159_v52 = vsel %vm153_vm1, %v151_v47, 0.0 }
  0x95   :  { %v110_v46 = vpop.f32.mrf.mxu3  ;;  %v158_v49 = vadd.f32 %v157_v43, %v156_v45 }
  0x96   :  { %v111_v48 = vadd.f32 %v110_v46, %v57_v36 }
  0x97   :  { %v160_v54 = vadd.f32 %v159_v52, %v158_v49 }
  0x98   :  { %v117_v50 = vmax.f32 %v111_v48, 0.0 }
  0x9a   :  { %v152_v53 = vmul.f32 %v146_v51, %v117_v50 }
  0x9c   :  { %v161_v55 = vsel %vm153_vm1, %v152_v53, 0.0 }
  0x9d   :  { %v162_v56 = vadd.f32 %v161_v55, %v160_v54 }
  0x9f   :  { %v163_v57 = vrot.slane %v162_v56, 4 }
  0xa1   :  { %v164_v58 = vadd.f32 %v163_v57, %v162_v56 }
  0xa3   :  { %v165_v59 = vrot.slane %v164_v58, 2 }
  0xa5   :  { %v166_v60 = vadd.f32 %v165_v59, %v164_v58 }
  0xa7   :  { %v167_v61 = vrot.slane %v166_v60, 1 }
  0xa9   :  { %v168_v63 = vadd.f32 %v167_v61, %v166_v60 }
  0xab   :  { %v171_v0 = vadd.f32 %v170_v62, %v168_v63 }
  0xad   :  { %v172_v1 = vsub.f32 0.0, %v171_v0 }
  0xaf   :  { %v173_v2 = vmul.f32 1.442695, %v172_v1 }
  0xb1   :  { %227 = vpow2.f32 %v173_v2 }
  0xb7   :  { %v228_v3 = vpop.eup %227 }
  0xb8   :  { %v175_v4 = vadd.f32 1.0, %v228_v3 }
  0xba   :  { %229 = vrcp.f32 %v175_v4  ;;  %v187_v8 = vand.u32 2147483648, %v175_v4  ;;  %v185_v10 = vand.u32 2147483647, %v175_v4  ;;  %vm181_vm3 = vweird.f32 %v175_v4 }
  0xbc   :  { %v188_v12 = vor.u32 1.1754944e-38, %v187_v8  ;;  %vm186_vm6 = vcmp.eq.f32.partialorder %v185_v10, 8.507059e+37 }
  0xc0   :  { %v230_v5 = vpop.eup %229 }
  0xc1   :  { %v177_v6 = vmul.f32 %v230_v5, %v175_v4  ;;  %vm182_vm2 = vweird.f32 %v230_v5 }
  0xc2   :  { %vm183_vm4 = vmor %vm181_vm3, %vm182_vm2 }
  0xc3   :  { %v178_v7 = vsub.f32 1.0, %v177_v6 }
  0xc5   :  { %v179_v9 = vmul.f32 %v230_v5, %v178_v7 }
  0xc7   :  { %v180_v11 = vadd.f32 %v230_v5, %v179_v9 }
  0xc9   :  { %v184_v13 = vsel %vm183_vm4, %v230_v5, %v180_v11 }
  0xca   :  { %v189_v14 = vsel %vm186_vm6, %v188_v12, %v184_v13 }
  0xcb   :  { %192 = vst.msk [vmem:[#allocation3] sm:$0x1] %vm191_vm5, %v189_v14 }
  0xcc   :  { %203 = dma.vmem_to_hbm [thread:$0]  %s199_s26, 16, %s201_s4, [#allocation4]  }
  0xcd   :  { %255 = dma.done.wait [#allocation4], 16  }
  0xce   :  { %256 = vsyncadd [#allocation4], 4294967280 }
  0xcf   :  { %208 = vsyncpa [#allocation4], 1 }

</bundles_post_ra>
